<compile_context>
chip_gen: v6e
topology: v6e:2x2x1
jax: 0.10.0
libtpu: 0.0.40
codegen_flags: <defaults>
</compile_context>

<pallas_src>
import numpy as np
import jax
import jax.numpy as jnp
from jax import lax
from jax.experimental import pallas as pl
from jax.experimental.pallas import tpu as pltpu

_TWO_PI = 2.0 * np.pi
_HALF_PI = 0.5 * np.pi


def _round_up(x, m):
    return ((x + m - 1) // m) * m


def _prompt_encoder_kernel(inp_ref, params_ref, out_ref):
    # inp_ref    : [TM, 8] f32  cols: x_raw, y_raw, 1.0, 0.0, oh(-1), oh(1), oh(2), oh(3)
    # params_ref : [16, D] f32  rows 0..7  : angle weights (gx', gy', bias|bias+pi/2, 0...)
    #                            rows 8..15 : embedding weights (0,0,0,0, inv, pt, tl, br)
    # out_ref    : [TM, D]      D = 2*F ; out = sin(ang_full) + onehot @ emb
    inp = inp_ref[...]                                     # [TM, 8]

    # Angle projection on the MXU (K=8, constant-folded normalization + 2*pi).
    ang = jnp.dot(inp, params_ref[0:8, :],
                  preferred_element_type=jnp.float32,
                  precision=lax.Precision.HIGHEST)         # [TM, D]

    # Label-gated embedding add as a one-hot matmul on the MXU.
    addend = jnp.dot(inp, params_ref[8:16, :],
                     preferred_element_type=jnp.float32,
                     precision=lax.Precision.HIGHEST)      # [TM, D]

    # Fused sin/cos: second half of the bias row carries +pi/2, so a single sin
    # over the full-width angle yields [sin(ang) | cos(ang)].
    out_ref[...] = (jnp.sin(ang) + addend).astype(out_ref.dtype)


def prompt_encoder_forward(coords, labels, gaussian_matrix, embed_weights,
                           input_image_size, *, tile_m=4096,
                           out_dtype=jnp.float32):
    """Pallas-backed PromptEncoder.forward.

    coords:          [B, N, 2] float   (x, y) pixel coordinates
    labels:          [B, N]    int     in {-1, 1, 2, 3} (others -> PE only)
    gaussian_matrix: [2, F]    float32 (F = embed_dim // 2)
    embed_weights:   [4, D]    float32 rows: invalid, point, bbox_tl, bbox_br
    returns:         [B, N, D] out_dtype
    """
    B, N, _ = coords.shape
    M = B * N
    F = gaussian_matrix.shape[1]
    D = 2 * F
    H, W = input_image_size

    # ---- one-time parameter transform (constant folding) --------------------
    # 2*((c+0.5)/size) - 1  ->  c * (2/size) + (1/size - 1); then *2*pi and @g.
    g = gaussian_matrix.astype(jnp.float32)
    gx = (2.0 * _TWO_PI / float(W)) * g[0]                               # [F]
    gy = (2.0 * _TWO_PI / float(H)) * g[1]                               # [F]
    bias = _TWO_PI * ((1.0 / float(W) - 1.0) * g[0] +
                      (1.0 / float(H) - 1.0) * g[1])                     # [F]

    gx_full = jnp.concatenate([gx, gx])                                  # [D]
    gy_full = jnp.concatenate([gy, gy])                                  # [D]
    bias_full = jnp.concatenate([bias, bias + _HALF_PI])                 # cos = sin(x+pi/2)

    zeros_d = jnp.zeros((D,), jnp.float32)
    w_ang = jnp.stack([gx_full, gy_full, bias_full,
                       zeros_d, zeros_d, zeros_d, zeros_d, zeros_d], axis=0)   # [8, D]
    emb = embed_weights.astype(jnp.float32)                                     # [4, D]
    w_emb = jnp.concatenate([jnp.zeros((4, D), jnp.float32), emb], axis=0)      # [8, D]
    params = jnp.concatenate([w_ang, w_emb], axis=0)                            # [16, D]

    # ---- pack activations: one lane-packed slab per point --------------------
    coords_f = coords.reshape(M, 2).astype(jnp.float32)                 # [M, 2]
    labels_i = labels.reshape(M)
    lab_vals = jnp.asarray([-1, 1, 2, 3], dtype=labels_i.dtype)
    onehot = (labels_i[:, None] == lab_vals[None, :]).astype(jnp.float32)  # [M, 4]
    packed = jnp.concatenate(
        [coords_f,
         jnp.ones((M, 1), jnp.float32),     # multiplies the bias row
         jnp.zeros((M, 1), jnp.float32),    # padding column (zero weight row)
         onehot], axis=-1)                  # [M, 8]

    # ---- tile over M (sublane axis) ------------------------------------------
    m8 = _round_up(max(M, 1), 8)
    num_steps = max(1, pl.cdiv(m8, int(tile_m)))
    if m8 >= 16:
        num_steps = max(num_steps, 2)       # v7x megacore: let 2 TCs split the grid
    tm = _round_up(pl.cdiv(m8, num_steps), 8)
    m_pad = num_steps * tm                  # padding bounded by < 8*num_steps rows
    if m_pad != M:
        packed = jnp.pad(packed, ((0, m_pad - M), (0, 0)))
    grid = (num_steps,)

    out_itemsize = jnp.dtype(out_dtype).itemsize
    # Double-buffered VMEM footprint: input block lane-pads 8 -> 128 lanes.
    vmem_footprint = 2 * tm * (128 * 4 + D * out_itemsize) + 16 * D * 4
    vmem_limit = int(min(max(vmem_footprint + (4 << 20), 32 << 20), 48 << 20))

    cost = pl.CostEstimate(
        flops=2 * 2 * m_pad * 8 * D + m_pad * D,     # two K=8 matmuls + one add
        transcendentals=m_pad * D,                    # sin over [M, D]
        bytes_accessed=m_pad * 8 * 4 + 16 * D * 4 + m_pad * D * out_itemsize,
    )

    out = pl.pallas_call(
        _prompt_encoder_kernel,
        out_shape=jax.ShapeDtypeStruct((m_pad, D), out_dtype),
        grid_spec=pltpu.PrefetchScalarGridSpec(
            num_scalar_prefetch=0,
            grid=grid,
            in_specs=[
                pl.BlockSpec((tm, 8), lambda i: (i, 0)),    # packed x/y/1/0/one-hot
                pl.BlockSpec((16, D), lambda i: (0, 0)),    # resident folded params
            ],
            out_specs=pl.BlockSpec((tm, D), lambda i: (i, 0)),
        ),
        compiler_params=pltpu.CompilerParams(
            dimension_semantics=("parallel",),              # megacore sharding on v7x
            vmem_limit_bytes=vmem_limit),
        cost_estimate=cost,
    )(packed, params)

    if m_pad != M:
        out = out[:M]
    return out.reshape(B, N, D)


def _reference_forward(coords, labels, gaussian_matrix, embed_weights,
                       input_image_size):
    """Pure-JAX reference mirroring the PyTorch module semantics."""
    H, W = input_image_size
    pts = coords.astype(jnp.float32) + 0.5
    x = pts[..., 0] / W
    y = pts[..., 1] / H
    c = jnp.stack([x, y], axis=-1)
    c = 2.0 * c - 1.0
    proj = jnp.matmul(c, gaussian_matrix, precision=lax.Precision.HIGHEST)
    ang = _TWO_PI * proj
    pe = jnp.concatenate([jnp.sin(ang), jnp.cos(ang)], axis=-1)
    for row, lab in enumerate((-1, 1, 2, 3)):
        mask = (labels == lab)[..., None].astype(jnp.float32)
        pe = pe + mask * embed_weights[row][None, None, :]
    return pe


if __name__ == "__main__":
    # Real EfficientSAM config (lane-dense output: F=128, D=256), small B*N.
    embed_dim = 256
    num_pos_feats = embed_dim // 2
    input_image_size = (1024, 1024)       # (H, W)
    image_embedding_size = (64, 64)       # unused by forward()

    B, N = 2, 8

    key = jax.random.PRNGKey(0)
    k_gauss, k_inv, k_pt, k_tl, k_br, k_coords, k_labels = jax.random.split(key, 7)

    # Deterministic parameter init (matches torch.randn / nn.Embedding N(0,1)).
    gaussian_matrix = jax.random.normal(k_gauss, (2, num_pos_feats), jnp.float32)
    embed_weights = jnp.stack([
        jax.random.normal(k_inv, (embed_dim,), jnp.float32),  # invalid_points
        jax.random.normal(k_pt, (embed_dim,), jnp.float32),   # point_embeddings
        jax.random.normal(k_tl, (embed_dim,), jnp.float32),   # bbox_top_left
        jax.random.normal(k_br, (embed_dim,), jnp.float32),   # bbox_bottom_right
    ], axis=0)                                                # [4, D]

    coords = jax.random.uniform(k_coords, (B, N, 2), jnp.float32,
                                minval=0.0, maxval=float(input_image_size[1]))
    labels = jax.random.choice(k_labels, jnp.array([-1, 1, 2, 3], jnp.int32),
                               shape=(B, N))

    out = prompt_encoder_forward(coords, labels, gaussian_matrix, embed_weights,
                                 input_image_size)
    out = jax.block_until_ready(out)

    ref = _reference_forward(coords, labels, gaussian_matrix, embed_weights,
                             input_image_size)
    np.testing.assert_allclose(np.asarray(out), np.asarray(ref),
                               rtol=1e-4, atol=1e-4)
    assert out.shape == (B, N, embed_dim)

    # TODO(synk): get_dense_pe() / PositionEmbeddingRandom.forward(size) (dense
    # grid PE) is not on this forward path and is not implemented here.
    print("KERNEL_OK")
</pallas_src>

<mosaic_0001>
module attributes {stable_mosaic.version = 11 : i64} {
  func.func @_prompt_encoder_kernel(%arg0: i32, %arg1: memref<8x8xf32, #tpu.memory_space<vmem>>, %arg2: memref<16x256xf32, #tpu.memory_space<vmem>>, %arg3: memref<8x256xf32, #tpu.memory_space<vmem>>) attributes {dimension_semantics = [#tpu.dimension_semantics<parallel>], iteration_bounds = array<i64: 2>, scalar_prefetch = 0 : i64, scratch_operands = 0 : i64, tpu.core_type = #tpu.core_type<tc>, window_params = [{transform_indices = @transform_0, window_bounds = array<i64: 8, 8>}, {pipeline_mode = #tpu.pipeline_mode<synchronous>, transform_indices = @transform_1, window_bounds = array<i64: 16, 256>}, {transform_indices = @transform_2, window_bounds = array<i64: 8, 256>}]} {
    %c0 = arith.constant 0 : index
    %c0_0 = arith.constant 0 : index
    %0 = vector.load %arg1[%c0, %c0_0] : memref<8x8xf32, #tpu.memory_space<vmem>>, vector<8x8xf32>
    %c0_1 = arith.constant 0 : index
    %c0_2 = arith.constant 0 : index
    %1 = vector.load %arg2[%c0_1, %c0_2] : memref<16x256xf32, #tpu.memory_space<vmem>>, vector<8x256xf32>
    %cst = arith.constant dense<0.000000e+00> : vector<8x256xf32>
    %2 = tpu.matmul %0, %1, %cst {dimension_numbers = #tpu.dot_dimension_numbers<[1], [0], [0], [1], [0, 0, 1, 1], [], []>, precision = #tpu.contract_precision<fp32>} : vector<8x8xf32>, vector<8x256xf32>, vector<8x256xf32> -> vector<8x256xf32>
    %c8 = arith.constant 8 : index
    %c0_3 = arith.constant 0 : index
    %3 = vector.load %arg2[%c8, %c0_3] : memref<16x256xf32, #tpu.memory_space<vmem>>, vector<8x256xf32>
    %cst_4 = arith.constant dense<0.000000e+00> : vector<8x256xf32>
    %4 = tpu.matmul %0, %3, %cst_4 {dimension_numbers = #tpu.dot_dimension_numbers<[1], [0], [0], [1], [0, 0, 1, 1], [], []>, precision = #tpu.contract_precision<fp32>} : vector<8x8xf32>, vector<8x256xf32>, vector<8x256xf32> -> vector<8x256xf32>
    %5 = math.sin %2 : vector<8x256xf32>
    %6 = arith.addf %5, %4 : vector<8x256xf32>
    %c0_5 = arith.constant 0 : index
    %c0_6 = arith.constant 0 : index
    %7 = vector.load %arg3[%c0_5, %c0_6] : memref<8x256xf32, #tpu.memory_space<vmem>>, vector<8x256xf32>
    tpu.vector_store %arg3[%c0_5, %c0_6], %6 {strides = array<i32>} : memref<8x256xf32, #tpu.memory_space<vmem>>, vector<8x256xf32>,
    return
  }
  func.func @transform_0(%arg0: i32) -> (i32, i32) {
    %c0_i32 = arith.constant 0 : i32
    %c0_i32_0 = arith.constant 0 : i32
    return %arg0, %c0_i32 : i32, i32
  }
  func.func @transform_1(%arg0: i32) -> (i32, i32) {
    %c0_i32 = arith.constant 0 : i32
    %c0_i32_0 = arith.constant 0 : i32
    %c0_i32_1 = arith.constant 0 : i32
    return %c0_i32, %c0_i32_0 : i32, i32
  }
  func.func @transform_2(%arg0: i32) -> (i32, i32) {
    %c0_i32 = arith.constant 0 : i32
    %c0_i32_0 = arith.constant 0 : i32
    return %arg0, %c0_i32 : i32, i32
  }
}

</mosaic_0001>

<bundles_post_ra>
// kernel: tpu_custom_call.1
= control target key start
LH: loop header
LB: loop body
LE: loop exit
PB: predicated region body
PF: predicated region fallthrough
CT: control target
= control target key end

     0   :  { %7 = vsyncpa [#allocation3], 0  ;;  %s1818_s0 = inlined_call_operand.vmem [shape: f32[16,8], index: 0, kind: input, shape index: {}]   ;;  %s1819_s1 = inlined_call_operand.hbm [shape: f32[16,256], index: 1, kind: input, shape index: {}]   ;;  %s1820_s2 = inlined_call_operand.hbm [shape: f32[16,256], index: 2, kind: output, shape index: {}]  }
   0x1   :  { %8 = vsyncpa [#allocation4], 0 }
   0x2   :  { %10 = vsyncpa [#allocation4 + $0x1], 0  ;;  %s1606_s9 = smov 0   ;;  %s1608_s10 = smov 0  }
   0x3   :  { %s1610_s11 = smov 0   ;;  %s1612_s12 = smov 0  }
   0x4 LB: > { %s1627_s13 = sadd.s32 4294967295, %s1578_s12   ;;  %s1391_s14 = sadd.s32 4294967294, %s1578_s12   ;;  %s1578_s12 = sphi %s1612_s12, %s1832_s12   ;;  %s1574_s11 = sphi %s1610_s11, %s1831_s11   ;;  %s1570_s10 = sphi %s1608_s10, %s1830_s10   ;;  %s1566_s9 = sphi %s1606_s9, %s1829_s9  }
   0x5   : > { %s1631_s15 = sadd.s32 1, %s1578_s12   ;;  %s70_s16 = sadd.s32 1, %s1574_s11 }
   0x6   : > { %s67_s17 = ssub.s32 %s1578_s12, %s1631_s15  ;;  %p80_p0 = scmp.ne.s32.totalorder %s1574_s11, %s1570_s10 }
   0x7   : > { %p68_p1 = scmp.eq.s32.totalorder %s67_s17, 0  ;;  %p81_p2 = scmp.eq.s32.totalorder %s1627_s13, 1 }
   0x8   : > { %p86_p3 = scmp.ne.s32.totalorder %s1570_s10, %s1566_s9  ;;  %p87_p4 = scmp.eq.s32.totalorder %s1391_s14, 1 }
   0x9   : > { %s1642_s18 = scalar_select %p68_p1, %s1574_s11, %s70_s16  }
   0xa   : > { %p1644_p5 = por %p81_p2, %p80_p0  ;;  %p1648_p6 = por %p87_p4, %p86_p3 }
   0xb   : > { %p1392_p7 = scmp.ge.s32.totalorder %s1578_s12, 1  ;;  %p94_p8 = scmp.lt.s32.totalorder %s1578_s12, 3 }
   0xc   : > { %s1822_s20 = scalar_select %p1648_p6, 1, 0 }
   0xd   : > { %p1435_p9 = scmp.eq.s32.totalorder %s1627_s13, 0  ;;  %p1655_p10 = pnand %p1392_p7, %p94_p8 }
   0xe   : > { %s1580_s22 = smov [#allocation2]  }
   0xf   : > { %s106_s23 = sshll.u32 %s1580_s22, 4  ;;  %p1427_p11 = pneg %p1655_p10  ;;  %s107_s23 = int_to_ptr.vmem [resolvable:$true] %s106_s23 }
  0x10   : > { %s1499_s24 = scalar_lea.vmem %s107_s23, 512  ;;  %p1507_p3 = scmp.lt.s32.totalorder %s107_s23, %s107_s23 }
  0x11   : > { %p1428_p12 = pnand %p1435_p9, %p1427_p11  ;;  %p1500_p0 = scmp.ne.s32.totalorder %s107_s23, %s1499_s24 }
  0x12   : > { %p1508_p4 = scmp.lt.s32.totalorder %s1499_s24, %s1499_s24 }
  0x13   : > { %p1490_p13 = pneg %p1428_p12 }
  0x14   : > { %p1509_p6 = por %p1508_p4, %p1507_p3 }
  0x15   : > { %p1502_p1 = pnand %p1500_p0, %p1490_p13 }
  0x17   : > { %p1503_p2 = pneg %p1502_p1 }
  0x19   : > { %p1510_p7 = pnand %p1509_p6, %p1503_p2 }
  0x1b   : > { %1513 = shalt.err (!%p1510_p7)
}
  0x1c   : > { %s1581_s25 = smov 256   ;;  %s1582_s26 = smov 16  }
  0x1d   : > { %1430 = dma.hbm_to_vmem [thread:$0]  (!%p1428_p12), %s1819_s1, 512, %s107_s23, [#allocation3], %s1581_s25, %s1581_s25, %s1582_s26  }
  0x1e   : > { %129 = sbr.rel (%p1655_p10) target bundleno = 366 (0x16e), region = 28 }
  0x23   : > { %1557 = dma.done.wait (%p1435_p9), [#allocation3], 512  }
  0x24   : > { %1559 = vsyncadd (%p1435_p9), [#allocation3], 4294966784  ;;  %p150_p8 = scmp.lt.s32.totalorder %s1627_s13, 1  ;;  %v1583_v0 = vmov 0.0   ;;  %vm157_vm0 = vcmask 64512   ;;  %v156_v1 = vld [vmem:[#allocation2 + $0x8] sm:$0xff] }
  0x25   : > { %227 = vmatprep.mubr.f32.mxu0 %v1583_v0  ;;  %313 = vmatprep.mubr.f32.mxu1 %v1583_v0  ;;  %v155_v2 = vld [vmem:[#allocation2] sm:$0xff]  ;;  %v191_v4 = vand.u32 4294901760, %v156_v1  ;;  %v627_v7 = vld [vmem:[#allocation2 + $0x18] sm:$0xff]  ;;  %v626_v8 = vld [vmem:[#allocation2 + $0x10] sm:$0xff]  ;;  %s147_s6 = sand.u32 1, %s1570_s10   ;;  %s1412_s14 = sshll.u32 %s1627_s13, 8 }
  0x26   : > { %s151_s29 = scalar_select %p150_p8, %s1627_s13, 1  ;;  %v193_v5 = vand.u32 4294901760, %v155_v2  ;;  %v658_v10 = vand.u32 4294901760, %v627_v7  ;;  %v660_v13 = vand.u32 4294901760, %v626_v8 }
  0x27   : > { %192 = vmatprep.subr.mxu0 %v191_v4  ;;  %v270_v11 = vsub.f32 %v156_v1, %v191_v4  ;;  %s1397_s7 = sshll.u32 %s147_s6, 4  ;;  %s1318_s22 = scalar_lea.hbm %s1820_s2, %s1412_s14 }
  0x28   : > { %s1398_s30 = sshll.u32 %s151_s29, 3  ;;  %v276_v12 = vsub.f32 %v155_v2, %v193_v5  ;;  %194 = vmatpush1.msra.mxu0 %v193_v5  ;;  %v737_v18 = vsub.f32 %v627_v7, %v658_v10  ;;  %v743_v21 = vsub.f32 %v626_v8, %v660_v13  ;;  %v1584_v8 = vmov 683565275   ;;  %s149_s8 = scalar_lea.vmem [#allocation5], %s1397_s7 }
  0x29   : > { %s153_s5 = scalar_lea.vmem %s1818_s0, %s1398_s30  ;;  %v271_v15 = vand.u32 4294901760, %v270_v11  ;;  %353 = vmatprep.subr.mxu0 %v270_v11  ;;  %s1320_s16 = sshll.u32 %s149_s8, 4  ;;  %s1321_s16 = int_to_ptr.vmem [resolvable:$true] %s1320_s16 }
  0x2a   : > { %v154_v3 = vld [vmem:[%s153_s5] sm:$0xff]  ;;  %v277_v16 = vand.u32 4294901760, %v276_v12  ;;  %v738_v26 = vand.u32 4294901760, %v737_v18  ;;  %v744_v27 = vand.u32 4294901760, %v743_v21  ;;  %s1306_s23 = scalar_lea.sflag [#allocation4], %s147_s6  ;;  %s1514_s24 = scalar_lea.vmem %s1321_s16, 256 }
  0x2b   : > { %v159_v6 = vsel %vm157_vm0, %v154_v3, 0  ;;  %v272_v19 = vsub.f32 %v270_v11, %v271_v15  ;;  %v1585_v11 = vmov 2475754826   ;;  %p1515_p6 = scmp.ne.s32.totalorder %s1321_s16, %s1514_s24  ;;  %s1590_s13 = smov [#allocation5]  }
  0x2c   : > { %v1679_v9 = vand.u32 4294901760, %v159_v6  ;;  %v278_v20 = vsub.f32 %v276_v12, %v277_v16  ;;  %v739_v28 = vsub.f32 %v737_v18, %v738_v26  ;;  %v745_v29 = vsub.f32 %v743_v21, %v744_v27  ;;  %s1518_s25 = sshll.u32 %s1590_s13, 4  ;;  %s1519_s25 = int_to_ptr.vmem [resolvable:$false] %s1518_s25 }
  0x2d   : > { %v273_v23 = vand.u32 4294901760, %v272_v19  ;;  %p1516_p9 = pnand %p1515_p6, %p1644_p5  ;;  %s1520_s26 = scalar_lea.vmem %s1519_s25, 512 }
  0x2e   : > { %v229_v14 = vsub.f32 %v159_v6, %v1679_v9  ;;  %v279_v24 = vand.u32 4294901760, %v278_v20  ;;  %v740_v30 = vand.u32 4294901760, %v739_v28  ;;  %v746_v31 = vand.u32 4294901760, %v745_v29  ;;  %p1521_p11 = scmp.lt.s32.totalorder %s1321_s16, %s1519_s25  ;;  %p1522_p12 = scmp.lt.s32.totalorder %s1520_s26, %s1514_s24 }
  0x2f   : > { %274 = vmatprep.subr.mxu1 %v273_v23  ;;  %p1517_p10 = pneg %p1516_p9 }
  0x30   : > { %v230_v17 = vand.u32 4294901760, %v229_v14  ;;  %280 = vmatpush1.msra.mxu1 %v279_v24  ;;  %v1589_v24 = vmov 1326507024   ;;  %p1523_p13 = por %p1522_p12, %p1521_p11 }
  0x31   : > { %315 = vmatmul.mubr.f32.vlgmr.msra.gmra.mxu1 %v1679_v9  ;;  %429 = vmatprep.subr.mxu1 %v191_v4 }
  0x32   : > { %v231_v22 = vsub.f32 %v229_v14, %v230_v17  ;;  %431 = vmatpush1.msra.mxu1 %v193_v5  ;;  %464 = vmatprep.mubr.f32.mxu1 %v1583_v0  ;;  %p1524_p0 = pnand %p1523_p13, %p1517_p10 }
  0x33   : > { %583 = vmatprep.subr.mxu1 %v191_v4 }
  0x34   : > { %v232_v25 = vand.u32 4294901760, %v231_v22 }
  0x35   : > { %468 = vmatmul.mubr.f32.vlgmr.msra.gmra.mxu1 %v230_v17 }
  0x36   : > { %233 = vmatmul.mubr.f32.vlgmr.msra.gmra.mxu0 %v232_v25  ;;  %585 = vmatpush1.msra.mxu1 %v193_v5 }
  0x37   : > { %356 = vmatpush1.msra.mxu0 %v276_v12  ;;  %389 = vmatprep.mubr.f32.mxu0 %v1583_v0 }
  0x38   : > { %507 = vmatprep.subr.mxu0 %v271_v15  ;;  %618 = vmatprep.mubr.f32.mxu1 %v1583_v0  ;;  %v1587_v15 = vmov 2102212464  }
  0x39   : > { %620 = vmatmul.mubr.f32.vlgmr.msra.gmra.mxu1 %v1679_v9  ;;  %741 = vmatprep.subr.mxu1 %v740_v30 }
  0x3a   : > { %392 = vmatmul.mubr.f32.vlgmr.msra.gmra.mxu0 %v229_v14  ;;  %747 = vmatpush1.msra.mxu1 %v746_v31 }
  0x3b   : > { %511 = vmatpush1.msra.mxu0 %v277_v16  ;;  %544 = vmatprep.mubr.f32.mxu0 %v1583_v0 }
  0x3c   : > { %659 = vmatprep.subr.mxu0 %v658_v10  ;;  %780 = vmatprep.mubr.f32.mxu1 %v1583_v0 }
  0x3d   : > { %782 = vmatmul.mubr.f32.vlgmr.msra.gmra.mxu1 %v1679_v9  ;;  %896 = vmatprep.subr.mxu1 %v658_v10 }
  0x3e   : > { %546 = vmatmul.mubr.f32.vlgmr.msra.gmra.mxu0 %v1679_v9  ;;  %898 = vmatpush1.msra.mxu1 %v660_v13 }
  0x3f   : > { %661 = vmatpush1.msra.mxu0 %v660_v13  ;;  %694 = vmatprep.mubr.f32.mxu0 %v1583_v0 }
  0x40   : > { %820 = vmatprep.subr.mxu0 %v737_v18  ;;  %931 = vmatprep.mubr.f32.mxu1 %v1583_v0 }
  0x41   : > { %935 = vmatmul.mubr.f32.vlgmr.msra.gmra.mxu1 %v230_v17  ;;  %1050 = vmatprep.subr.mxu1 %v658_v10  ;;  %v1588_v17 = vmov 920167782  }
  0x42   : > { %700 = vmatmul.mubr.f32.vlgmr.msra.gmra.mxu0 %v232_v25  ;;  %1052 = vmatpush1.msra.mxu1 %v660_v13  ;;  %v1586_v13 = vmov 2131351028  }
  0x43   : > { %823 = vmatpush1.msra.mxu0 %v743_v21  ;;  %856 = vmatprep.mubr.f32.mxu0 %v1583_v0 }
  0x44   : > { %974 = vmatprep.subr.mxu0 %v738_v26  ;;  %1085 = vmatprep.mubr.f32.mxu1 %v1583_v0 }
  0x45   : > { %1087 = vmatmul.mubr.f32.vlgmr.msra.gmra.mxu1 %v1679_v9 }
  0x46   : > { %859 = vmatmul.mubr.f32.vlgmr.msra.gmra.mxu0 %v229_v14 }
  0x47   : > { %978 = vmatpush1.msra.mxu0 %v744_v27  ;;  %1011 = vmatprep.mubr.f32.mxu0 %v1583_v0 }
  0x4a   : > { %1013 = vmatmul.mubr.f32.vlgmr.msra.gmra.mxu0 %v1679_v9 }
  0xf1   : > { %v316_v33 = vpop.f32.mrf.mxu1 }
  0xf3   : > { %v318_v36 = vpop.f32.mrf.mxu1 }
  0xf5   : > { %v469_v40 = vpop.f32.mrf.mxu1 }
  0xf6   : > { %v234_v32 = vpop.f32.mrf.mxu0 }
  0xf7   : > { %v317_v34 = vadd.f32 %v316_v33, %v234_v32  ;;  %v471_v44 = vpop.f32.mrf.mxu1 }
  0xf8   : > { %v236_v35 = vpop.f32.mrf.mxu0 }
  0xf9   : > { %v319_v37 = vadd.f32 %v318_v36, %v236_v35  ;;  %v621_v48 = vpop.f32.mrf.mxu1 }
  0xfa   : > { %v393_v38 = vpop.f32.mrf.mxu0 }
  0xfb   : > { %v394_v39 = vadd.f32 %v393_v38, %v317_v34  ;;  %v623_v52 = vpop.f32.mrf.mxu1 }
  0xfc   : > { %v395_v41 = vpop.f32.mrf.mxu0 }
  0xfd   : > { %v470_v42 = vadd.f32 %v469_v40, %v394_v39  ;;  %v396_v43 = vadd.f32 %v395_v41, %v319_v37 }
  0xfe   : > { %v547_v45 = vpop.f32.mrf.mxu0 }
  0xff   : > { %v472_v46 = vadd.f32 %v471_v44, %v396_v43  ;;  %v548_v47 = vadd.f32 %v547_v45, %v470_v42 }
 0x100   : > { %v549_v49 = vpop.f32.mrf.mxu0 }
 0x101   : > { %v1698_v50 = vadd.f32 %v621_v48, %v548_v47  ;;  %v550_v51 = vadd.f32 %v549_v49, %v472_v46 }
 0x103   : > { %v1093_v53 = vand.u32 2147483647, %v1698_v50  ;;  %v1096_v54 = vand.u32 2139095040, %v1698_v50  ;;  %v1702_v55 = vadd.f32 %v623_v52, %v550_v51  ;;  %vm1095_vm15 = vcmp.lt.s32.totalorder %v1698_v50, 0 }
 0x105   : > { %v1097_v56 = vshrl.u32 %v1096_v54, 23  ;;  %v1100_v57 = vand.u32 8388607, %v1093_v53  ;;  %v1200_v58 = vand.u32 2139095040, %v1702_v55  ;;  %v1197_v60 = vand.u32 2147483647, %v1702_v55 }
 0x106   : > { %vm1755_vm0 = vcmp.le.f32.partialorder %v1093_v53, 0.7853982 }
 0x107   : > { %v1399_v59 = vadd.s32 4294967169, %v1097_v56  ;;  %v1201_v61 = vshrl.u32 %v1200_v58, 23  ;;  %v1101_v63 = vor.u32 8388608, %v1100_v57  ;;  %v1204_v1 = vand.u32 8388607, %v1197_v60 }
 0x109   : > { %v1103_v62 = vadd.s32 1, %v1399_v59  ;;  %v1403_v0 = vadd.s32 4294967169, %v1201_v61  ;;  %v1710_v6 = vshll.u32 %v1101_v63, 8  ;;  %v1205_v10 = vor.u32 8388608, %v1204_v1 }
 0x10b   : > { %vm1104_vm1 = vcmp.gt.s32.totalorder %v1103_v62, 0  ;;  %v1207_v3 = vadd.s32 1, %v1403_v0  ;;  %v1245_v43 = vshll.u32 %v1205_v10, 8 }
 0x10c   : > { %v1105_v2 = vsel %vm1104_vm1, %v1103_v62, 0  ;;  %vm1199_vm1 = vcmp.lt.s32.totalorder %v1702_v55, 0 }
 0x10d   : > { %v1106_v4 = vshrl.u32 %v1105_v2, 5  ;;  %v1107_v5 = vand.u32 31, %v1105_v2  ;;  %vm1208_vm2 = vcmp.gt.s32.totalorder %v1207_v3, 0 }
 0x10e   : > { %v1209_v29 = vsel %vm1208_vm2, %v1207_v3, 0  ;;  %vm1768_vm2 = vcmp.le.f32.partialorder %v1197_v60, 0.7853982 }
 0x10f   : > { %v1108_v7 = vsub.s32 32, %v1107_v5  ;;  %v1110_v9 = vshll.u32 %v1584_v8, %v1107_v5  ;;  %v1113_v12 = vshll.u32 %v1585_v11, %v1107_v5  ;;  %v1116_v14 = vshll.u32 %v1586_v13, %v1107_v5 }
 0x110   : > { %v1119_v16 = vshll.u32 %v1587_v15, %v1107_v5  ;;  %v1122_v18 = vshll.u32 %v1588_v17, %v1107_v5  ;;  %vm1125_vm3 = vcmp.lt.s32.totalorder %v1106_v4, 1  ;;  %vm1127_vm4 = vcmp.lt.s32.totalorder %v1106_v4, 3 }
 0x111   : > { %v1111_v19 = vshrl.u32 %v1585_v11, %v1108_v7  ;;  %v1114_v20 = vshrl.u32 %v1586_v13, %v1108_v7  ;;  %v1117_v21 = vshrl.u32 %v1587_v15, %v1108_v7  ;;  %v1109_v22 = vshrl.u32 %v1584_v8, %v1108_v7 }
 0x112   : > { %v1120_v23 = vshrl.u32 %v1588_v17, %v1108_v7  ;;  %v1123_v25 = vshrl.u32 %v1589_v24, %v1108_v7  ;;  %vm1128_vm5 = vcmp.lt.s32.totalorder %v1106_v4, 4  ;;  %v1211_v32 = vand.u32 31, %v1209_v29 }
 0x113   : > { %v1112_v26 = vor.u32 %v1111_v19, %v1110_v9  ;;  %v1115_v27 = vor.u32 %v1114_v20, %v1113_v12  ;;  %v1118_v28 = vor.u32 %v1117_v21, %v1116_v14  ;;  %vm1126_vm6 = vcmp.lt.s32.totalorder %v1106_v4, 2 }
 0x114   : > { %v1121_v30 = vor.u32 %v1120_v23, %v1119_v16  ;;  %v1124_v31 = vor.u32 %v1123_v25, %v1122_v18  ;;  %v1212_v40 = vsub.s32 32, %v1211_v32  ;;  %v1210_v47 = vshrl.u32 %v1209_v29, 5 }
 0x115   : > { %v1129_v33 = vsel %vm1125_vm3, %v1109_v22, %v1112_v26  ;;  %v1130_v34 = vsel %vm1128_vm5, %v1118_v28, 2102212464  ;;  %v1133_v35 = vsel %vm1125_vm3, %v1112_v26, %v1115_v27  ;;  %v1137_v36 = vsel %vm1125_vm3, %v1115_v27, %v1118_v28 }
 0x116   : > { %v1131_v37 = vsel %vm1127_vm4, %v1115_v27, %v1130_v34  ;;  %v1134_v38 = vsel %vm1128_vm5, %v1121_v30, 920167782  ;;  %v1138_v39 = vsel %vm1128_vm5, %v1124_v31, 1326507024  ;;  %v1214_v54 = vshll.u32 %v1584_v8, %v1211_v32 }
 0x117   : > { %v1135_v41 = vsel %vm1127_vm4, %v1118_v28, %v1134_v38  ;;  %v1139_v42 = vsel %vm1127_vm4, %v1121_v30, %v1138_v39  ;;  %v1132_v44 = vsel %vm1126_vm6, %v1129_v33, %v1131_v37  ;;  %v1215_v56 = vshrl.u32 %v1585_v11, %v1212_v40 }
 0x118   : > { %v1136_v45 = vsel %vm1126_vm6, %v1133_v35, %v1135_v41  ;;  %v1140_v46 = vsel %vm1126_vm6, %v1137_v36, %v1139_v42  ;;  %v1217_v57 = vshll.u32 %v1585_v11, %v1211_v32  ;;  %v1218_v58 = vshrl.u32 %v1586_v13, %v1212_v40 }
 0x119   : > { %v1722_v48 = vmul.u32.u64.low %v1710_v6, %v1140_v46  ;;  %v1723_v49 = vmul.u32.u64.high %v1710_v6, %v1140_v46, %v1722_v48  ;;  %v1726_v51 = vmul.u32.u64.low %v1710_v6, %v1136_v45  ;;  %v1727_v52 = vmul.u32.u64.high %v1710_v6, %v1136_v45, %v1726_v51 }
 0x11a   : > { %v1220_v59 = vshll.u32 %v1586_v13, %v1211_v32  ;;  %v1221_v61 = vshrl.u32 %v1587_v15, %v1212_v40  ;;  %v1223_v62 = vshll.u32 %v1587_v15, %v1211_v32  ;;  %v1224_v63 = vshrl.u32 %v1588_v17, %v1212_v40 }
 0x11b   : > { %v1216_v0 = vor.u32 %v1215_v56, %v1214_v54  ;;  %v1219_v1 = vor.u32 %v1218_v58, %v1217_v57  ;;  %v1226_v2 = vshll.u32 %v1588_v17, %v1211_v32  ;;  %v1227_v3 = vshrl.u32 %v1589_v24, %v1212_v40 }
 0x11c   : > { %v1148_v4 = vmul.u32 %v1710_v6, %v1132_v44  ;;  %vm1150_vm7 = vc.u32 %v1723_v49, %v1726_v51  ;;  %v1151_v5 = vadd.s32 1, %v1727_v52  ;;  %v1222_v7 = vor.u32 %v1221_v61, %v1220_v59 }
 0x11d   : > { %v1213_v9 = vshrl.u32 %v1584_v8, %v1212_v40  ;;  %v1225_v10 = vor.u32 %v1224_v63, %v1223_v62  ;;  %v1228_v11 = vor.u32 %v1227_v3, %v1226_v2  ;;  %vm1229_vm8 = vcmp.lt.s32.totalorder %v1210_v47, 1 }
 0x11e   : > { %v1152_v12 = vsel %vm1150_vm7, %v1151_v5, %v1727_v52  ;;  %vm1231_vm9 = vcmp.lt.s32.totalorder %v1210_v47, 3  ;;  %vm1232_vm10 = vcmp.lt.s32.totalorder %v1210_v47, 4  ;;  %v1237_v13 = vsel %vm1229_vm8, %v1216_v0, %v1219_v1 }
 0x11f   : > { %v1153_v14 = vadd.s32 %v1152_v12, %v1148_v4  ;;  %v1234_v15 = vsel %vm1232_vm10, %v1222_v7, 2102212464  ;;  %v1238_v16 = vsel %vm1232_vm10, %v1225_v10, 920167782  ;;  %v1241_v6 = vsel %vm1229_vm8, %v1219_v1, %v1222_v7 }
 0x120   : > { %vm1230_vm11 = vcmp.lt.s32.totalorder %v1210_v47, 2  ;;  %v1233_v17 = vsel %vm1229_vm8, %v1213_v9, %v1216_v0  ;;  %v1239_v18 = vsel %vm1231_vm9, %v1222_v7, %v1238_v16  ;;  %v1242_v19 = vsel %vm1232_vm10, %v1228_v11, 1326507024  ;;  %v701_v11 = vpop.f32.mrf.mxu0 }
 0x121   : > { %v1154_v20 = vadd.s32 536870912, %v1153_v14  ;;  %v1235_v21 = vsel %vm1231_vm9, %v1219_v1, %v1234_v15  ;;  %v1240_v22 = vsel %vm1230_vm11, %v1237_v13, %v1239_v18  ;;  %v1243_v8 = vsel %vm1231_vm9, %v1225_v10, %v1242_v19  ;;  %v783_v19 = vpop.f32.mrf.mxu1 }
 0x122   : > { %v1244_v23 = vsel %vm1230_vm11, %v1241_v6, %v1243_v8  ;;  %v1737_v24 = vmul.u32.u64.low %v1245_v43, %v1240_v22  ;;  %v1738_v25 = vmul.u32.u64.high %v1245_v43, %v1240_v22, %v1737_v24  ;;  %v1236_v29 = vsel %vm1230_vm11, %v1233_v17, %v1235_v21  ;;  %v703_v18 = vpop.f32.mrf.mxu0 }
 0x123   : > { %v1155_v26 = vshrl.u32 %v1154_v20, 30  ;;  %v1740_v27 = vmul.u32.u64.low %v1245_v43, %v1244_v23  ;;  %v1741_v28 = vmul.u32.u64.high %v1245_v43, %v1244_v23, %v1740_v27  ;;  %v1252_v33 = vmul.u32 %v1245_v43, %v1236_v29 }
 0x124   : > { %v1255_v31 = vadd.s32 1, %v1738_v25  ;;  %v1149_v43 = vadd.s32 %v1726_v51, %v1723_v49  ;;  %v784_v8 = vadd.f32 %v783_v19, %v701_v11  ;;  %vm1185_vm6 = vweird.f32 %v1698_v50 }
 0x125   : > { %v1156_v30 = vshll.u32 %v1155_v26, 30  ;;  %vm1254_vm12 = vc.u32 %v1741_v28, %v1737_v24  ;;  %v1253_v4 = vadd.s32 %v1737_v24, %v1741_v28  ;;  %v1179_v12 = vsub.s32 4, %v1155_v26  ;;  %v785_v24 = vpop.f32.mrf.mxu1 }
 0x126   : > { %v1256_v34 = vsel %vm1254_vm12, %v1255_v31, %v1738_v25  ;;  %v860_v25 = vpop.f32.mrf.mxu0  ;;  %vm1289_vm10 = vweird.f32 %v1702_v55 }
 0x127   : > { %v1157_v32 = vsub.s32 %v1153_v14, %v1156_v30  ;;  %v1257_v36 = vadd.s32 %v1256_v34, %v1252_v33  ;;  %v1180_v20 = vsel %vm1095_vm15, %v1179_v12, %v1155_v26  ;;  %v861_v28 = vadd.f32 %v860_v25, %v784_v8  ;;  %v936_v34 = vpop.f32.mrf.mxu1 }
 0x128   : > { %v1182_v23 = vsel %vm1755_vm0, 0, %v1180_v20  ;;  %v862_v33 = vpop.f32.mrf.mxu0 }
 0x129   : > { %v1159_v35 = vsub.s32 0, %v1157_v32  ;;  %v1258_v38 = vadd.s32 536870912, %v1257_v36  ;;  %v1186_v29 = vadd.s32 3, %v1182_v23  ;;  %v938_v60 = vpop.f32.mrf.mxu1 }
 0x12b   : > { %v1400_v37 = vmin.u32 %v1159_v35, %v1157_v32  ;;  %v1746_v40 = vshrl.u32 %v1258_v38, 30  ;;  %v937_v35 = vadd.f32 %v936_v34, %v861_v28  ;;  %v786_v38 = vadd.f32 %v785_v24, %v703_v18 }
 0x12d   : > { %v1161_v39 = vclz %v1400_v37  ;;  %v1260_v42 = vshll.u32 %v1746_v40, 30  ;;  %v1283_v30 = vsub.s32 4, %v1746_v40 }
 0x12f   : > { %v1401_v41 = vadd.s32 4294967294, %v1161_v39  ;;  %v1261_v44 = vsub.s32 %v1257_v36, %v1260_v42  ;;  %v1187_v36 = vand.u32 3, %v1186_v29  ;;  %v1284_v37 = vsel %vm1199_vm1, %v1283_v30, %v1746_v40 }
 0x131   : > { %vm1402_vm13 = vcmp.lt.s32.totalorder %v1401_v41, 0  ;;  %v1263_v48 = vsub.s32 0, %v1261_v44  ;;  %vm1192_vm3 = vcmp.eq.s32.totalorder %v1187_v36, 2  ;;  %vm1189_vm4 = vcmp.eq.s32.totalorder %v1187_v36, 0 }
 0x132   : > { %v1164_v45 = vsel %vm1402_vm13, 0, %v1401_v41  ;;  %v1014_v41 = vpop.f32.mrf.mxu0  ;;  %vm1188_vm5 = vcmp.lt.s32.totalorder %v1187_v36, 2 }
 0x133   : > { %v1165_v46 = vsub.s32 32, %v1164_v45  ;;  %v1169_v47 = vsub.s32 4294967266, %v1164_v45  ;;  %v1166_v52 = vshll.u32 %v1157_v32, %v1164_v45  ;;  %v1404_v57 = vmin.u32 %v1263_v48, %v1261_v44 }
 0x135   : > { %v1167_v54 = vshrl.u32 %v1149_v43, %v1165_v46  ;;  %v1170_v56 = vadd.s32 127, %v1169_v47  ;;  %v1265_v61 = vclz %v1404_v57  ;;  %v1286_v43 = vsel %vm1768_vm2, 0, %v1284_v37 }
 0x136   : > { %v863_v47 = vadd.f32 %v862_v33, %v786_v38 }
 0x137   : > { %v1168_v58 = vor.u32 %v1167_v54, %v1166_v52  ;;  %v1171_v59 = vshll.u32 %v1170_v56, 23  ;;  %v1405_v63 = vadd.s32 4294967294, %v1265_v61  ;;  %v1088_v52 = vpop.f32.mrf.mxu1  ;;  %v1290_v54 = vadd.s32 3, %v1286_v43 }
 0x139   : > { %v1172_v62 = vor.u32 4788187, %v1171_v59  ;;  %v1175_v1 = vcvt.s32.f32 %v1168_v58  ;;  %vm1406_vm14 = vcmp.lt.s32.totalorder %v1405_v63, 0  ;;  %v939_v59 = vadd.f32 %v938_v60, %v863_v47 }
 0x13a   : > { %v1268_v2 = vsel %vm1406_vm14, 0, %v1405_v63  ;;  %v1291_v63 = vand.u32 3, %v1290_v54 }
 0x13b   : > { %v1173_v0 = vand.u32 2147483647, %v1172_v62  ;;  %v1269_v49 = vsub.s32 32, %v1268_v2  ;;  %v1273_v51 = vsub.s32 4294967266, %v1268_v2  ;;  %v1270_v7 = vshll.u32 %v1261_v44, %v1268_v2  ;;  %v1016_v62 = vpop.f32.mrf.mxu0 }
 0x13c   : > { %v1015_v44 = vadd.f32 %v1014_v41, %v937_v35  ;;  %v1017_v2 = vadd.f32 %v1016_v62, %v939_v59  ;;  %vm1296_vm7 = vcmp.eq.s32.totalorder %v1291_v63, 2  ;;  %vm1293_vm8 = vcmp.eq.s32.totalorder %v1291_v63, 0 }
 0x13d   : > { %v1176_v3 = vmul.f32 %v1175_v1, %v1173_v0  ;;  %v1271_v9 = vshrl.u32 %v1253_v4, %v1269_v49  ;;  %v1274_v10 = vadd.s32 127, %v1273_v51  ;;  %v1090_v4 = vpop.f32.mrf.mxu1  ;;  %vm1292_vm9 = vcmp.lt.s32.totalorder %v1291_v63, 2 }
 0x13e   : > { %v1089_v56 = vadd.f32 %v1088_v52, %v1015_v44 }
 0x13f   : > { %v1177_v5 = vxor.u32 2147483648, %v1176_v3  ;;  %v1272_v15 = vor.u32 %v1271_v9, %v1270_v7  ;;  %v1275_v16 = vshll.u32 %v1274_v10, 23 }
 0x141   : > { %v1178_v14 = vsel %vm1095_vm15, %v1177_v5, %v1176_v3  ;;  %v1276_v17 = vor.u32 4788187, %v1275_v16  ;;  %v1279_v22 = vcvt.s32.f32 %v1272_v15  ;;  %v1091_v5 = vadd.f32 %v1090_v4, %v1017_v2 }
 0x142   : > { %v1181_v6 = vsel %vm1755_vm0, %v1698_v50, %v1178_v14 }
 0x143   : > { %1480 = vcosq.f32 %v1181_v6  ;;  %v1277_v21 = vand.u32 2147483647, %v1276_v17 }
 0x144   : > { %1482 = vsinq.f32 %v1181_v6 }
 0x145   : > { %v1280_v53 = vmul.f32 %v1279_v22, %v1277_v21 }
 0x147   : > { %v1281_v27 = vxor.u32 2147483648, %v1280_v53 }
 0x149   : > { %v1282_v31 = vsel %vm1199_vm1, %v1281_v27, %v1280_v53 }
 0x14a   : > { %v1285_v32 = vsel %vm1768_vm2, %v1702_v55, %v1282_v31 }
 0x14b   : > { %1484 = vcosq.f32 %v1285_v32 }
 0x14c   : > { %1486 = vsinq.f32 %v1285_v32 }
 0x150   : > { %v1481_v39 = vpop.eup %1480 }
 0x151   : > { %v1483_v42 = vpop.eup %1482  ;;  %v1193_v45 = vxor.u32 2147483648, %v1481_v39 }
 0x152   : > { %v1190_v46 = vxor.u32 2147483648, %v1483_v42 }
 0x153   : > { %v1194_v48 = vsel %vm1192_vm3, %v1193_v45, %v1483_v42 }
 0x154   : > { %v1191_v40 = vsel %vm1189_vm4, %v1481_v39, %v1190_v46 }
 0x155   : > { %v1195_v57 = vsel %vm1188_vm5, %v1191_v40, %v1194_v48 }
 0x156   : > { %v1196_v58 = vsel %vm1185_vm6, nan, %v1195_v57 }
 0x157   : > { %v1301_v61 = vadd.f32 %v1196_v58, %v1089_v56 }
 0x158   : > { %v1485_v0 = vpop.eup %1484 }
 0x159   : > { %1303 = vst [vmem:[%s149_s8] sm:$0xff] %v1301_v61  ;;  %v1487_v1 = vpop.eup %1486  ;;  %v1297_v3 = vxor.u32 2147483648, %v1485_v0 }
 0x15a   : > { %v1294_v49 = vxor.u32 2147483648, %v1487_v1 }
 0x15b   : > { %v1298_v51 = vsel %vm1296_vm7, %v1297_v3, %v1487_v1 }
 0x15c   : > { %v1295_v50 = vsel %vm1293_vm8, %v1485_v0, %v1294_v49 }
 0x15d   : > { %v1299_v7 = vsel %vm1292_vm9, %v1295_v50, %v1298_v51 }
 0x15e   : > { %v1300_v9 = vsel %vm1289_vm10, nan, %v1299_v7 }
 0x15f   : > { %v1302_v10 = vadd.f32 %v1300_v9, %v1091_v5 }
 0x161   : > { %1304 = vst [vmem:[%s149_s8 + $0x8] sm:$0xff] %v1302_v10 }
 0x162   : > { %1527 = shalt.err (!%p1524_p0)
}
 0x163   : > { %s1528_s27 = scalar_lea.hbm %s1318_s22, 256  ;;  %s1532_s30 = scalar_lea.hbm %s1820_s2, 512 }
 0x164   : > { %p1529_p1 = scmp.ne.s32.totalorder %s1318_s22, %s1528_s27  ;;  %p1533_p4 = scmp.lt.s32.totalorder %s1318_s22, %s1820_s2 }
 0x165   : > { %p1534_p7 = scmp.lt.s32.totalorder %s1532_s30, %s1528_s27 }
 0x166   : > { %p1530_p2 = pnand %p1529_p1, %p1644_p5 }
 0x167   : > { %p1535_p8 = por %p1534_p7, %p1533_p4 }
 0x168   : > { %p1531_p3 = pneg %p1530_p2 }
 0x16a   : > { %p1536_p6 = pnand %p1535_p8, %p1531_p3 }
 0x16c   : > { %1539 = shalt.err (!%p1536_p6)
}
 0x16d   : > { %1425 = dma.vmem_to_hbm [thread:$0]  (%p1644_p5), %s1321_s16, 256, %s1318_s22, %s1306_s23  }
 0x16e PF: > { %p1437_p9 = scmp.ge.s32.totalorder %s1578_s12, 2  ;;  %s1332_s5 = sand.u32 1, %s1566_s9  }
 0x16f   : > { %p1828_p10 = scmp.ne.s32.totalorder %s1822_s20, 0  ;;  %s1333_s6 = scalar_lea.sflag [#allocation4], %s1332_s5 }
 0x171   : > { %p1432_p11 = pnand %p1437_p9, %p1828_p10 }
 0x173   : > { %p1433_p12 = pneg %p1432_p11 }
 0x175   : > { %1561 = dma.done.wait (%p1433_p12), %s1333_s6, 256  }
 0x176   : > { %1563 = vsyncadd (%p1433_p12), %s1333_s6, 4294967040  ;;  %p13_p13 = scmp.ge.s32.totalorder %s1631_s15, 4   ;;  %s1829_s9 = smov %s1570_s10 }
 0x177   : > { %s1830_s10 = smov %s1574_s11  ;;  %s1831_s11 = smov %s1642_s18 }
 0x178   : > { %s1832_s12 = smov %s1631_s15  ;;  %15 = sbr.rel (!%p13_p13) target bundleno = 4 (0x4), region = 68 }
 0x17d   :  { %1338 = vsyncpa [#allocation3], 1 }
 0x17e   :  { %1340 = vsyncpa [#allocation3 + $0x1], 1 }
 0x17f   :  { %1341 = vsyncpa [#allocation4], 1 }
 0x180   :  { %1343 = vsyncpa [#allocation4 + $0x1], 1 }

</bundles_post_ra>
